<compile_context>
chip_gen: v5e
topology: v5e:2x2
jax: 0.10.0
libtpu: 0.0.40
codegen_flags: <defaults>
</compile_context>

<pallas_src>
import functools

import jax
import jax.numpy as jnp
from jax.experimental import pallas as pl
from jax.experimental.pallas import tpu as pltpu


def _attention_kernel(x_ref, wq_ref, wk_ref, wv_ref, wp_ref, bias_ref,
                      xvv_ref, xori_ref, *, scale):
    h = pl.program_id(1)

    x = x_ref[0].astype(jnp.bfloat16)                    # (N, C)

    # Per-head projections: bf16 operands, f32 accumulation on the MXU.
    q = jnp.dot(x, wq_ref[0], preferred_element_type=jnp.float32)   # (N, hd)
    k = jnp.dot(x, wk_ref[0], preferred_element_type=jnp.float32)
    v = jnp.dot(x, wv_ref[0], preferred_element_type=jnp.float32)
    vb = v.astype(jnp.bfloat16)

    def attend(a, b):
        # a @ b.T expressed as a contraction over the last dims (no materialized
        # transpose), then a max-subtracted softmax with the divide on the EUP.
        s = jax.lax.dot_general(a, b, (((1,), (1,)), ((), ())),
                                preferred_element_type=jnp.float32) * scale
        s = s - jnp.max(s, axis=-1, keepdims=True)
        p = jnp.exp(s)
        p = p * pl.reciprocal(jnp.sum(p, axis=-1, keepdims=True), approx=True)
        # TODO(synk): attn_drop is identity (p=0.0); nonzero-p dropout would use
        # pltpu.prng_seed + pltpu.stateful_bernoulli here.
        return jnp.dot(p.astype(jnp.bfloat16), vb, preferred_element_type=jnp.float32)

    o_ori = attend(q.astype(jnp.bfloat16), k.astype(jnp.bfloat16))   # standard q.kT
    o_vv = attend(vb, vb)                                            # q = k = v path

    # Per-head slice of the output projection: proj(concat heads) == sum_h o_h @ Wp_h.
    wp = wp_ref[0]                                        # (hd, C), bf16
    part_ori = jnp.dot(o_ori.astype(jnp.bfloat16), wp,
                       preferred_element_type=jnp.float32)
    part_vv = jnp.dot(o_vv.astype(jnp.bfloat16), wp,
                      preferred_element_type=jnp.float32)

    @pl.when(h == 0)
    def _():
        xvv_ref[...] = jnp.zeros_like(xvv_ref)
        xori_ref[...] = jnp.zeros_like(xori_ref)

    xvv_ref[0] += part_vv.astype(xvv_ref.dtype)
    xori_ref[0] += part_ori.astype(xori_ref.dtype)

    @pl.when(h == pl.num_programs(1) - 1)
    def _():
        # proj bias added once after the head reduction (proj_drop identity, p=0.0).
        bias = bias_ref[0]
        xvv_ref[0] += bias.astype(xvv_ref.dtype)
        xori_ref[0] += bias.astype(xori_ref.dtype)


def attention_forward(x, wqkv, wproj, bproj, num_heads, qk_scale=None):
    """SupFAD Attention forward.

    x:     (B, N, C) float32
    wqkv:  (3C, C)  nn.Linear(dim, 3*dim, bias=False).weight  (qkv_bias=False default)
    wproj: (C, C)   nn.Linear(out_dim=dim, dim).weight
    bproj: (C,)     proj bias
    Returns (x, x_ori)  — the v.vT-attention output and the standard q.kT output.
    """
    B, N, C = x.shape
    H = num_heads
    hd = C // H
    scale = float(qk_scale) if qk_scale is not None else hd ** (-0.5)

    # One-time weight re-layout (outside the kernel): per-head bf16 tiles.
    # Within the qkv output features, layout is (q|k|v, head, hd) — head-major.
    def per_head_in(w):                       # (C_out=C, C_in=C) -> (H, C_in, hd)
        return jnp.transpose(w.reshape(H, hd, C), (0, 2, 1)).astype(jnp.bfloat16)

    wq_h = per_head_in(wqkv[:C])
    wk_h = per_head_in(wqkv[C:2 * C])
    wv_h = per_head_in(wqkv[2 * C:])
    wp_h = wproj.T.reshape(H, hd, C).astype(jnp.bfloat16)   # per-head out-proj slice
    bias = bproj.reshape(1, C).astype(jnp.float32)

    kernel = functools.partial(_attention_kernel, scale=scale)

    # Per-head weight tiles: streamed (block index depends only on the head axis),
    # so the full weight set is never resident in VMEM — this, plus bf16 storage,
    # is how the v7x/v5e VMEM-budget feedback is addressed.
    def head_spec(a):
        return pl.BlockSpec((1,) + a.shape[1:], lambda b, h: (h, 0, 0))

    x_vv, x_ori = pl.pallas_call(
        kernel,
        out_shape=(jax.ShapeDtypeStruct((B, N, C), x.dtype),
                   jax.ShapeDtypeStruct((B, N, C), x.dtype)),
        grid=(B, H),                                      # heads = reduction, innermost
        in_specs=[
            pl.BlockSpec((1, N, C), lambda b, h: (b, 0, 0)),   # x (resident across h)
            head_spec(wq_h), head_spec(wk_h), head_spec(wv_h), head_spec(wp_h),
            pl.BlockSpec((1, C), lambda b, h: (0, 0)),          # proj bias (constant)
        ],
        out_specs=(pl.BlockSpec((1, N, C), lambda b, h: (b, 0, 0)),
                   pl.BlockSpec((1, N, C), lambda b, h: (b, 0, 0))),
        compiler_params=pltpu.CompilerParams(
            dimension_semantics=("parallel", "arbitrary"),
            vmem_limit_bytes=48 * 1024 * 1024),
    )(x, wq_h, wk_h, wv_h, wp_h, bias)
    return x_vv, x_ori


def _reference(x, wqkv, wproj, bproj, num_heads):
    """Plain-JAX f32 reference with the exact PyTorch forward semantics."""
    B, N, C = x.shape
    hd = C // num_heads
    scale = hd ** (-0.5)
    qkv = (x @ wqkv.T).reshape(B, N, 3, num_heads, hd)
    qkv = jnp.transpose(qkv, (2, 0, 3, 1, 4))             # (3, B, H, N, hd)
    q, k, v = qkv[0], qkv[1], qkv[2]
    attn_ori = jax.nn.softmax((q @ jnp.swapaxes(k, -1, -2)) * scale, axis=-1)
    attn_vv = jax.nn.softmax((v @ jnp.swapaxes(v, -1, -2)) * scale, axis=-1)
    x_ori = jnp.transpose(attn_ori @ v, (0, 2, 1, 3)).reshape(B, N, C)
    x_vv = jnp.transpose(attn_vv @ v, (0, 2, 1, 3)).reshape(B, N, C)
    proj = lambda t: t @ wproj.T + bproj
    return proj(x_vv), proj(x_ori)


if __name__ == "__main__":
    B, N, C, H = 2, 8, 32, 4

    key = jax.random.PRNGKey(0)
    kx, kq, kp, kb = jax.random.split(key, 4)
    s = 0.1
    x = jax.random.normal(kx, (B, N, C), jnp.float32)
    wqkv = jax.random.normal(kq, (3 * C, C), jnp.float32) * s    # qkv.weight (bias=False)
    wproj = jax.random.normal(kp, (C, C), jnp.float32) * s       # proj.weight
    bproj = jax.random.normal(kb, (C,), jnp.float32) * s         # proj.bias

    out_vv, out_ori = attention_forward(x, wqkv, wproj, bproj, num_heads=H)
    out_vv, out_ori = jax.block_until_ready((out_vv, out_ori))

    ref_vv, ref_ori = _reference(x, wqkv, wproj, bproj, H)

    assert out_vv.shape == (B, N, C) and out_ori.shape == (B, N, C)
    # bf16 matmul operands (per the perf review) loosen the tolerance vs the f32 ref.
    assert jnp.allclose(out_vv, ref_vv, atol=3e-2, rtol=3e-2), "v.vT-attention output mismatch"
    assert jnp.allclose(out_ori, ref_ori, atol=3e-2, rtol=3e-2), "q.kT-attention output mismatch"

    print("KERNEL_OK")
</pallas_src>

<mosaic_0001>
module attributes {stable_mosaic.version = 11 : i64} {
  func.func @_attention_kernel(%arg0: i32, %arg1: i32, %arg2: memref<1x8x32xf32, #tpu.memory_space<vmem>>, %arg3: memref<1x32x8xbf16, #tpu.memory_space<vmem>>, %arg4: memref<1x32x8xbf16, #tpu.memory_space<vmem>>, %arg5: memref<1x32x8xbf16, #tpu.memory_space<vmem>>, %arg6: memref<1x8x32xbf16, #tpu.memory_space<vmem>>, %arg7: memref<1x32xf32, #tpu.memory_space<vmem>>, %arg8: memref<1x8x32xf32, #tpu.memory_space<vmem>>, %arg9: memref<1x8x32xf32, #tpu.memory_space<vmem>>) attributes {dimension_semantics = [#tpu.dimension_semantics<parallel>, #tpu.dimension_semantics<arbitrary>], iteration_bounds = array<i64: 2, 4>, scalar_prefetch = 0 : i64, scratch_operands = 0 : i64, tpu.core_type = #tpu.core_type<tc>, window_params = [{transform_indices = @transform_0, window_bounds = array<i64: 1, 8, 32>}, {transform_indices = @transform_1, window_bounds = array<i64: 1, 32, 8>}, {transform_indices = @transform_2, window_bounds = array<i64: 1, 32, 8>}, {transform_indices = @transform_3, window_bounds = array<i64: 1, 32, 8>}, {transform_indices = @transform_4, window_bounds = array<i64: 1, 8, 32>}, {pipeline_mode = #tpu.pipeline_mode<synchronous>, transform_indices = @transform_5, window_bounds = array<i64: 1, 32>}, {transform_indices = @transform_6, window_bounds = array<i64: 1, 8, 32>}, {transform_indices = @transform_7, window_bounds = array<i64: 1, 8, 32>}]} {
    %c0 = arith.constant 0 : index
    %c0_0 = arith.constant 0 : index
    %c0_1 = arith.constant 0 : index
    %0 = vector.load %arg2[%c0, %c0_0, %c0_1] : memref<1x8x32xf32, #tpu.memory_space<vmem>>, vector<1x8x32xf32>
    %1 = vector.shape_cast %0 : vector<1x8x32xf32> to vector<8x32xf32>
    %2 = arith.truncf %1 : vector<8x32xf32> to vector<8x32xbf16>
    %c0_2 = arith.constant 0 : index
    %c0_3 = arith.constant 0 : index
    %c0_4 = arith.constant 0 : index
    %3 = vector.load %arg3[%c0_2, %c0_3, %c0_4] : memref<1x32x8xbf16, #tpu.memory_space<vmem>>, vector<1x32x8xbf16>
    %4 = vector.shape_cast %3 : vector<1x32x8xbf16> to vector<32x8xbf16>
    %cst = arith.constant dense<0.000000e+00> : vector<8x8xf32>
    %5 = tpu.matmul %2, %4, %cst {dimension_numbers = #tpu.dot_dimension_numbers<[1], [0], [0], [1], [0, 0, 1, 1], [], []>} : vector<8x32xbf16>, vector<32x8xbf16>, vector<8x8xf32> -> vector<8x8xf32>
    %c0_5 = arith.constant 0 : index
    %c0_6 = arith.constant 0 : index
    %c0_7 = arith.constant 0 : index
    %6 = vector.load %arg4[%c0_5, %c0_6, %c0_7] : memref<1x32x8xbf16, #tpu.memory_space<vmem>>, vector<1x32x8xbf16>
    %7 = vector.shape_cast %6 : vector<1x32x8xbf16> to vector<32x8xbf16>
    %cst_8 = arith.constant dense<0.000000e+00> : vector<8x8xf32>
    %8 = tpu.matmul %2, %7, %cst_8 {dimension_numbers = #tpu.dot_dimension_numbers<[1], [0], [0], [1], [0, 0, 1, 1], [], []>} : vector<8x32xbf16>, vector<32x8xbf16>, vector<8x8xf32> -> vector<8x8xf32>
    %c0_9 = arith.constant 0 : index
    %c0_10 = arith.constant 0 : index
    %c0_11 = arith.constant 0 : index
    %9 = vector.load %arg5[%c0_9, %c0_10, %c0_11] : memref<1x32x8xbf16, #tpu.memory_space<vmem>>, vector<1x32x8xbf16>
    %10 = vector.shape_cast %9 : vector<1x32x8xbf16> to vector<32x8xbf16>
    %cst_12 = arith.constant dense<0.000000e+00> : vector<8x8xf32>
    %11 = tpu.matmul %2, %10, %cst_12 {dimension_numbers = #tpu.dot_dimension_numbers<[1], [0], [0], [1], [0, 0, 1, 1], [], []>} : vector<8x32xbf16>, vector<32x8xbf16>, vector<8x8xf32> -> vector<8x8xf32>
    %12 = arith.truncf %11 : vector<8x8xf32> to vector<8x8xbf16>
    %13 = arith.truncf %5 : vector<8x8xf32> to vector<8x8xbf16>
    %14 = arith.truncf %8 : vector<8x8xf32> to vector<8x8xbf16>
    %cst_13 = arith.constant dense<0.000000e+00> : vector<8x8xf32>
    %15 = tpu.matmul %13, %14, %cst_13 {dimension_numbers = #tpu.dot_dimension_numbers<[1], [1], [0], [0], [0, 0, 1, 0], [], []>} : vector<8x8xbf16>, vector<8x8xbf16>, vector<8x8xf32> -> vector<8x8xf32>
    %cst_14 = arith.constant 0.353553385 : f32
    %16 = vector.broadcast %cst_14 : f32 to vector<8x8xf32>
    %17 = arith.mulf %15, %16 : vector<8x8xf32>
    %cst_15 = arith.constant dense<0xFF800000> : vector<8xf32>
    %18 = vector.multi_reduction <maximumf>, %17, %cst_15 [1] : vector<8x8xf32> to vector<8xf32>
    %19 = vector.shape_cast %18 : vector<8xf32> to vector<8x1xf32>
    %20 = vector.broadcast %19 : vector<8x1xf32> to vector<8x8xf32>
    %21 = arith.subf %17, %20 : vector<8x8xf32>
    %22 = math.exp %21 : vector<8x8xf32>
    %cst_16 = arith.constant dense<0.000000e+00> : vector<8xf32>
    %23 = vector.multi_reduction <add>, %22, %cst_16 [1] : vector<8x8xf32> to vector<8xf32>
    %24 = vector.shape_cast %23 : vector<8xf32> to vector<8x1xf32>
    %25 = tpu.reciprocal %24 {approx = true} : vector<8x1xf32> -> vector<8x1xf32>
    %26 = vector.broadcast %25 : vector<8x1xf32> to vector<8x8xf32>
    %27 = arith.mulf %22, %26 : vector<8x8xf32>
    %28 = arith.truncf %27 : vector<8x8xf32> to vector<8x8xbf16>
    %cst_17 = arith.constant dense<0.000000e+00> : vector<8x8xf32>
    %29 = tpu.matmul %28, %12, %cst_17 {dimension_numbers = #tpu.dot_dimension_numbers<[1], [0], [0], [1], [0, 0, 1, 1], [], []>} : vector<8x8xbf16>, vector<8x8xbf16>, vector<8x8xf32> -> vector<8x8xf32>
    %cst_18 = arith.constant dense<0.000000e+00> : vector<8x8xf32>
    %30 = tpu.matmul %12, %12, %cst_18 {dimension_numbers = #tpu.dot_dimension_numbers<[1], [1], [0], [0], [0, 0, 1, 0], [], []>} : vector<8x8xbf16>, vector<8x8xbf16>, vector<8x8xf32> -> vector<8x8xf32>
    %cst_19 = arith.constant 0.353553385 : f32
    %31 = vector.broadcast %cst_19 : f32 to vector<8x8xf32>
    %32 = arith.mulf %30, %31 : vector<8x8xf32>
    %cst_20 = arith.constant dense<0xFF800000> : vector<8xf32>
    %33 = vector.multi_reduction <maximumf>, %32, %cst_20 [1] : vector<8x8xf32> to vector<8xf32>
    %34 = vector.shape_cast %33 : vector<8xf32> to vector<8x1xf32>
    %35 = vector.broadcast %34 : vector<8x1xf32> to vector<8x8xf32>
    %36 = arith.subf %32, %35 : vector<8x8xf32>
    %37 = math.exp %36 : vector<8x8xf32>
    %cst_21 = arith.constant dense<0.000000e+00> : vector<8xf32>
    %38 = vector.multi_reduction <add>, %37, %cst_21 [1] : vector<8x8xf32> to vector<8xf32>
    %39 = vector.shape_cast %38 : vector<8xf32> to vector<8x1xf32>
    %40 = tpu.reciprocal %39 {approx = true} : vector<8x1xf32> -> vector<8x1xf32>
    %41 = vector.broadcast %40 : vector<8x1xf32> to vector<8x8xf32>
    %42 = arith.mulf %37, %41 : vector<8x8xf32>
    %43 = arith.truncf %42 : vector<8x8xf32> to vector<8x8xbf16>
    %cst_22 = arith.constant dense<0.000000e+00> : vector<8x8xf32>
    %44 = tpu.matmul %43, %12, %cst_22 {dimension_numbers = #tpu.dot_dimension_numbers<[1], [0], [0], [1], [0, 0, 1, 1], [], []>} : vector<8x8xbf16>, vector<8x8xbf16>, vector<8x8xf32> -> vector<8x8xf32>
    %c0_23 = arith.constant 0 : index
    %c0_24 = arith.constant 0 : index
    %c0_25 = arith.constant 0 : index
    %45 = vector.load %arg6[%c0_23, %c0_24, %c0_25] : memref<1x8x32xbf16, #tpu.memory_space<vmem>>, vector<1x8x32xbf16>
    %46 = vector.shape_cast %45 : vector<1x8x32xbf16> to vector<8x32xbf16>
    %47 = arith.truncf %29 : vector<8x8xf32> to vector<8x8xbf16>
    %cst_26 = arith.constant dense<0.000000e+00> : vector<8x32xf32>
    %48 = tpu.matmul %47, %46, %cst_26 {dimension_numbers = #tpu.dot_dimension_numbers<[1], [0], [0], [1], [0, 0, 1, 1], [], []>} : vector<8x8xbf16>, vector<8x32xbf16>, vector<8x32xf32> -> vector<8x32xf32>
    %49 = arith.truncf %44 : vector<8x8xf32> to vector<8x8xbf16>
    %cst_27 = arith.constant dense<0.000000e+00> : vector<8x32xf32>
    %50 = tpu.matmul %49, %46, %cst_27 {dimension_numbers = #tpu.dot_dimension_numbers<[1], [0], [0], [1], [0, 0, 1, 1], [], []>} : vector<8x8xbf16>, vector<8x32xbf16>, vector<8x32xf32> -> vector<8x32xf32>
    %c0_i32 = arith.constant 0 : i32
    %51 = arith.cmpi eq, %arg1, %c0_i32 : i32
    %52 = arith.extui %51 : i1 to i32
    %c0_i32_28 = arith.constant 0 : i32
    %53 = arith.cmpi ne, %52, %c0_i32_28 : i32
    scf.if %53 {
      %cst_42 = arith.constant 0.000000e+00 : f32
      %69 = vector.broadcast %cst_42 : f32 to vector<1x8x32xf32>
      %c0_43 = arith.constant 0 : index
      %c0_44 = arith.constant 0 : index
      %c0_45 = arith.constant 0 : index
      %70 = vector.load %arg8[%c0_43, %c0_44, %c0_45] : memref<1x8x32xf32, #tpu.memory_space<vmem>>, vector<1x8x32xf32>
      tpu.vector_store %arg8[%c0_43, %c0_44, %c0_45], %69 {strides = array<i32>} : memref<1x8x32xf32, #tpu.memory_space<vmem>>, vector<1x8x32xf32>,
      %cst_46 = arith.constant 0.000000e+00 : f32
      %71 = vector.broadcast %cst_46 : f32 to vector<1x8x32xf32>
      %c0_47 = arith.constant 0 : index
      %c0_48 = arith.constant 0 : index
      %c0_49 = arith.constant 0 : index
      %72 = vector.load %arg9[%c0_47, %c0_48, %c0_49] : memref<1x8x32xf32, #tpu.memory_space<vmem>>, vector<1x8x32xf32>
      tpu.vector_store %arg9[%c0_47, %c0_48, %c0_49], %71 {strides = array<i32>} : memref<1x8x32xf32, #tpu.memory_space<vmem>>, vector<1x8x32xf32>,
    } else {
    }
    %c0_29 = arith.constant 0 : index
    %c0_30 = arith.constant 0 : index
    %c0_31 = arith.constant 0 : index
    %54 = vector.load %arg8[%c0_29, %c0_30, %c0_31] : memref<1x8x32xf32, #tpu.memory_space<vmem>>, vector<1x8x32xf32>
    %55 = vector.shape_cast %54 : vector<1x8x32xf32> to vector<8x32xf32>
    %56 = arith.addf %55, %50 : vector<8x32xf32>
    %c0_32 = arith.constant 0 : index
    %c0_33 = arith.constant 0 : index
    %c0_34 = arith.constant 0 : index
    %57 = vector.load %arg8[%c0_32, %c0_33, %c0_34] : memref<1x8x32xf32, #tpu.memory_space<vmem>>, vector<1x8x32xf32>
    %58 = vector.shape_cast %57 : vector<1x8x32xf32> to vector<8x32xf32>
    %59 = vector.shape_cast %56 : vector<8x32xf32> to vector<1x8x32xf32>
    tpu.vector_store %arg8[%c0_32, %c0_33, %c0_34], %59 {strides = array<i32>} : memref<1x8x32xf32, #tpu.memory_space<vmem>>, vector<1x8x32xf32>,
    %c0_35 = arith.constant 0 : index
    %c0_36 = arith.constant 0 : index
    %c0_37 = arith.constant 0 : index
    %60 = vector.load %arg9[%c0_35, %c0_36, %c0_37] : memref<1x8x32xf32, #tpu.memory_space<vmem>>, vector<1x8x32xf32>
    %61 = vector.shape_cast %60 : vector<1x8x32xf32> to vector<8x32xf32>
    %62 = arith.addf %61, %48 : vector<8x32xf32>
    %c0_38 = arith.constant 0 : index
    %c0_39 = arith.constant 0 : index
    %c0_40 = arith.constant 0 : index
    %63 = vector.load %arg9[%c0_38, %c0_39, %c0_40] : memref<1x8x32xf32, #tpu.memory_space<vmem>>, vector<1x8x32xf32>
    %64 = vector.shape_cast %63 : vector<1x8x32xf32> to vector<8x32xf32>
    %65 = vector.shape_cast %62 : vector<8x32xf32> to vector<1x8x32xf32>
    tpu.vector_store %arg9[%c0_38, %c0_39, %c0_40], %65 {strides = array<i32>} : memref<1x8x32xf32, #tpu.memory_space<vmem>>, vector<1x8x32xf32>,
    %c3_i32 = arith.constant 3 : i32
    %66 = arith.cmpi eq, %arg1, %c3_i32 : i32
    %67 = arith.extui %66 : i1 to i32
    %c0_i32_41 = arith.constant 0 : i32
    %68 = arith.cmpi ne, %67, %c0_i32_41 : i32
    scf.if %68 {
      %c0_42 = arith.constant 0 : index
      %c0_43 = arith.constant 0 : index
      %69 = vector.load %arg7[%c0_42, %c0_43] : memref<1x32xf32, #tpu.memory_space<vmem>>, vector<1x32xf32>
      %70 = vector.shape_cast %69 : vector<1x32xf32> to vector<32xf32>
      %c0_44 = arith.constant 0 : index
      %c0_45 = arith.constant 0 : index
      %c0_46 = arith.constant 0 : index
      %71 = vector.load %arg8[%c0_44, %c0_45, %c0_46] : memref<1x8x32xf32, #tpu.memory_space<vmem>>, vector<1x8x32xf32>
      %72 = vector.shape_cast %71 : vector<1x8x32xf32> to vector<8x32xf32>
      %73 = vector.shape_cast %70 : vector<32xf32> to vector<1x32xf32>
      %74 = vector.broadcast %73 : vector<1x32xf32> to vector<8x32xf32>
      %75 = arith.addf %72, %74 : vector<8x32xf32>
      %c0_47 = arith.constant 0 : index
      %c0_48 = arith.constant 0 : index
      %c0_49 = arith.constant 0 : index
      %76 = vector.load %arg8[%c0_47, %c0_48, %c0_49] : memref<1x8x32xf32, #tpu.memory_space<vmem>>, vector<1x8x32xf32>
      %77 = vector.shape_cast %76 : vector<1x8x32xf32> to vector<8x32xf32>
      %78 = vector.shape_cast %75 : vector<8x32xf32> to vector<1x8x32xf32>
      tpu.vector_store %arg8[%c0_47, %c0_48, %c0_49], %78 {strides = array<i32>} : memref<1x8x32xf32, #tpu.memory_space<vmem>>, vector<1x8x32xf32>,
      %c0_50 = arith.constant 0 : index
      %c0_51 = arith.constant 0 : index
      %c0_52 = arith.constant 0 : index
      %79 = vector.load %arg9[%c0_50, %c0_51, %c0_52] : memref<1x8x32xf32, #tpu.memory_space<vmem>>, vector<1x8x32xf32>
      %80 = vector.shape_cast %79 : vector<1x8x32xf32> to vector<8x32xf32>
      %81 = vector.shape_cast %70 : vector<32xf32> to vector<1x32xf32>
      %82 = vector.broadcast %81 : vector<1x32xf32> to vector<8x32xf32>
      %83 = arith.addf %80, %82 : vector<8x32xf32>
      %c0_53 = arith.constant 0 : index
      %c0_54 = arith.constant 0 : index
      %c0_55 = arith.constant 0 : index
      %84 = vector.load %arg9[%c0_53, %c0_54, %c0_55] : memref<1x8x32xf32, #tpu.memory_space<vmem>>, vector<1x8x32xf32>
      %85 = vector.shape_cast %84 : vector<1x8x32xf32> to vector<8x32xf32>
      %86 = vector.shape_cast %83 : vector<8x32xf32> to vector<1x8x32xf32>
      tpu.vector_store %arg9[%c0_53, %c0_54, %c0_55], %86 {strides = array<i32>} : memref<1x8x32xf32, #tpu.memory_space<vmem>>, vector<1x8x32xf32>,
    } else {
    }
    return
  }
  func.func @transform_0(%arg0: i32, %arg1: i32) -> (i32, i32, i32) {
    %c0_i32 = arith.constant 0 : i32
    %c0_i32_0 = arith.constant 0 : i32
    %c0_i32_1 = arith.constant 0 : i32
    return %arg0, %c0_i32, %c0_i32_0 : i32, i32, i32
  }
  func.func @transform_1(%arg0: i32, %arg1: i32) -> (i32, i32, i32) {
    %c0_i32 = arith.constant 0 : i32
    %c0_i32_0 = arith.constant 0 : i32
    %c0_i32_1 = arith.constant 0 : i32
    return %arg1, %c0_i32, %c0_i32_0 : i32, i32, i32
  }
  func.func @transform_2(%arg0: i32, %arg1: i32) -> (i32, i32, i32) {
    %c0_i32 = arith.constant 0 : i32
    %c0_i32_0 = arith.constant 0 : i32
    %c0_i32_1 = arith.constant 0 : i32
    return %arg1, %c0_i32, %c0_i32_0 : i32, i32, i32
  }
  func.func @transform_3(%arg0: i32, %arg1: i32) -> (i32, i32, i32) {
    %c0_i32 = arith.constant 0 : i32
    %c0_i32_0 = arith.constant 0 : i32
    %c0_i32_1 = arith.constant 0 : i32
    return %arg1, %c0_i32, %c0_i32_0 : i32, i32, i32
  }
  func.func @transform_4(%arg0: i32, %arg1: i32) -> (i32, i32, i32) {
    %c0_i32 = arith.constant 0 : i32
    %c0_i32_0 = arith.constant 0 : i32
    %c0_i32_1 = arith.constant 0 : i32
    return %arg1, %c0_i32, %c0_i32_0 : i32, i32, i32
  }
  func.func @transform_5(%arg0: i32, %arg1: i32) -> (i32, i32) {
    %c0_i32 = arith.constant 0 : i32
    %c0_i32_0 = arith.constant 0 : i32
    %c0_i32_1 = arith.constant 0 : i32
    return %c0_i32, %c0_i32_0 : i32, i32
  }
  func.func @transform_6(%arg0: i32, %arg1: i32) -> (i32, i32, i32) {
    %c0_i32 = arith.constant 0 : i32
    %c0_i32_0 = arith.constant 0 : i32
    %c0_i32_1 = arith.constant 0 : i32
    return %arg0, %c0_i32, %c0_i32_0 : i32, i32, i32
  }
  func.func @transform_7(%arg0: i32, %arg1: i32) -> (i32, i32, i32) {
    %c0_i32 = arith.constant 0 : i32
    %c0_i32_0 = arith.constant 0 : i32
    %c0_i32_1 = arith.constant 0 : i32
    return %arg0, %c0_i32, %c0_i32_0 : i32, i32, i32
  }
}

</mosaic_0001>

<bundles_post_ra>
// kernel: tpu_custom_call.1
= control target key start
LH: loop header
LB: loop body
LE: loop exit
PB: predicated region body
PF: predicated region fallthrough
CT: control target
= control target key end

     0   :  { %s1331_s0 = inlined_call_operand.vmem [shape: f32[2,8,32], index: 0, kind: input, shape index: {}]   ;;  %s1332_s1 = inlined_call_operand.vmem [shape: bf16[4,32,8], index: 1, kind: input, shape index: {}]   ;;  %s1333_s2 = inlined_call_operand.vmem [shape: bf16[4,32,8], index: 2, kind: input, shape index: {}]   ;;  %s1334_s3 = inlined_call_operand.vmem [shape: bf16[4,32,8], index: 3, kind: input, shape index: {}]   ;;  %s1335_s4 = inlined_call_operand.vmem [shape: bf16[4,8,32], index: 4, kind: input, shape index: {}]   ;;  %s1336_s5 = inlined_call_operand.vmem [shape: f32[1,32], index: 5, kind: input, shape index: {}]   ;;  %s1337_s6 = inlined_call_operand.hbm [shape: f32[2,8,32], index: 6, kind: output, shape index: {0}]   ;;  %s1338_s7 = inlined_call_operand.hbm [shape: f32[2,8,32], index: 7, kind: output, shape index: {1}]  }
   0x1   :  { %1341 = sst [smem:[#allocation11_spill]] %s1331_s0 }
   0x2   :  { %1342 = sst [smem:[#allocation12_spill]] %s1333_s2 }
   0x3   :  { %13 = vsyncpa [#allocation3], 0 }
   0x4   :  { %15 = vsyncpa [#allocation3 + $0x1], 0 }
   0x5   :  { %16 = vsyncpa [#allocation5], 0 }
   0x6   :  { %18 = vsyncpa [#allocation5 + $0x1], 0  ;;  %s1138_s24 = smov 0   ;;  %s1140_s25 = smov 0  }
   0x7   :  { %s1142_s26 = smov 0   ;;  %s1144_s27 = smov 0  }
   0x8   :  { %s1146_s28 = smov 0   ;;  %s1148_s29 = smov 0  }
   0x9   :  { %s1150_s30 = smov 0   ;;  %s1152_s8 = smov 0  }
   0xa LB: > { %1343 = sst [smem:[#allocation8_spill]] %s1091_s30  ;;  %s818_s9 = sadd.s32 4294967295, %s1095_s8   ;;  %s1095_s8 = sphi %s1152_s8, %s24_s8   ;;  %s1091_s30 = sphi %s1150_s30, %s1354_s30   ;;  %s1087_s29 = sphi %s1148_s29, %s1359_s29   ;;  %s1083_s28 = sphi %s1146_s28, %s1352_s28   ;;  %s1079_s27 = sphi %s1144_s27, %s1358_s27   ;;  %s1075_s26 = sphi %s1142_s26, %s1357_s26   ;;  %s1071_s25 = sphi %s1140_s25, %s1356_s25   ;;  %s1067_s24 = sphi %s1138_s24, %s1355_s24  }
   0xb   : > { %s819_s10 = sadd.s32 4294967294, %s1095_s8   ;;  %s33_s11 = sadd.s32 1, %s1087_s29 }
   0xc   : > { %p34_p0 = scmp.ge.s32.totalorder %s33_s11, 4  ;;  %s36_s12 = sadd.s32 1, %s1091_s30 }
   0xd   : > { %p204_p1 = scmp.ne.s32.totalorder %s1075_s26, %s1071_s25  ;;  %p205_p2 = scmp.eq.s32.totalorder %s818_s9, 7 }
   0xe   : > { %s1361_s11 = smov (%p34_p0, %s33_s11), 0  ;;  %s1363_s12 = smov (!%p34_p0, %s36_s12), %s1091_s30 }
   0xf   : > { %1344 = sst [smem:[#allocation9_spill]] %s1361_s11  ;;  %p1187_p3 = por %p205_p2, %p204_p1 }
  0x10   : > { %p210_p4 = scmp.ne.s32.totalorder %s1071_s25, %s1067_s24  ;;  %p38_p5 = scmp.ge.s32.totalorder %s1363_s12, 2 }
  0x11   : > { %p211_p6 = scmp.eq.s32.totalorder %s819_s10, 7  ;;  %p822_p7 = scmp.ge.s32.totalorder %s1095_s8, 1 }
  0x12   : > { %p296_p8 = scmp.lt.s32.totalorder %s1095_s8, 9  ;;  %s1365_s12 = smov (%p38_p5, %s1363_s12), 0 }
  0x13   : > { %1346 = sst [smem:[#allocation10_spill]] %s1365_s12  ;;  %p1197_p9 = por %p211_p6, %p210_p4 }
  0x14   : > { %p297_p10 = pnand %p822_p7, %p296_p8  ;;  %s191_s15 = ssub.s32 %s1091_s30, %s1365_s12 }
  0x15   : > { %s194_s16 = sadd.s32 1, %s1075_s26  ;;  %p192_p11 = scmp.eq.s32.totalorder %s191_s15, 0 }
  0x16   : > { %300 = sbr.rel (%p297_p10) target bundleno = 894 (0x37e), region = 44  ;;  %p355_p12 = scmp.lt.s32.totalorder (!%p297_p10), %s1079_s27, 3 }
  0x17   : > { %s1205_s17 = scalar_select %p192_p11, %s1075_s26, %s194_s16  }
  0x18   : > { %s1209_s18 = sand.u32 (!%p297_p10), 1, %s1071_s25   ;;  %p351_p13 = scmp.lt.s32.totalorder (!%p297_p10), %s1083_s28, 1 }
  0x19   : > { %s1348_s2 = sld [smem:[#allocation12_spill]] (!%p297_p10)  ;;  %p866_p0 = scmp.ne.s32.totalorder (!%p297_p10), %s1079_s27, 0 }
  0x1a   : > { %s1349_s0 = sld [smem:[#allocation11_spill]] (!%p297_p10) }
  0x1b   : > { %s1214_s20 = scalar_select %p355_p12, %s1079_s27, 3  ;;  %vm393_vm0 = vcmask 261120   ;;  %vm471_vm1 = vcmask 64512   ;;  %vm507_vm2 = vcmask 1043456  }
  0x1c   : > { %s352_s19 = scalar_select %p351_p13, %s1083_s28, 1 }
  0x1d   : > { %s874_s21 = sshll.u32 %s1214_s20, 4 }
  0x1e   : > { %s369_s16 = scalar_lea.vmem %s1334_s3, %s874_s21  ;;  %s359_s30 = scalar_lea.vmem %s1332_s1, %s874_s21 }
  0x1f   : > { %s364_s9 = scalar_lea.vmem %s1348_s2, %s874_s21  ;;  %v882_v1 = vld [vmem:[%s369_s16 + $0x8] sm:$0xff]  ;;  %v881_v4 = vld [vmem:[%s369_s16] sm:$0xff]  ;;  %s825_s22 = sshll.u32 %s352_s19, 3 }
  0x20   : > { %v880_v0 = vld [vmem:[%s364_s9 + $0x8] sm:$0xff]  ;;  %461 = vmatpush.bf16.msra.mxu2 %v882_v1  ;;  %v879_v3 = vld [vmem:[%s364_s9] sm:$0xff]  ;;  %s354_s10 = scalar_lea.vmem %s1349_s0, %s825_s22  ;;  %s832_s2 = sshll.u32 %s1214_s20, 2 }
  0x21   : > { %v878_v2 = vld [vmem:[%s359_s30 + $0x8] sm:$0xff]  ;;  %432 = vmatpush.bf16.msra.mxu1 %v880_v0  ;;  %v877_v5 = vld [vmem:[%s359_s30] sm:$0xff]  ;;  %s373_s12 = scalar_lea.vmem %s1335_s4, %s832_s2  ;;  %s1350_s19 = sshll.u32 %s1209_s18, 3 }
  0x22   : > { %403 = vmatpush.bf16.msra.mxu0 %v878_v2  ;;  %v375_v6 = vld [vmem:[%s354_s10] sm:$0xff]  ;;  %s343_s20 = scalar_lea.vmem [#allocation2], %s1350_s19  ;;  %s1351_s21 = smov %s1350_s19 }
  0x23   : > { %v376_v7 = vpack.c.bf16 %v375_v6, %v375_v6  ;;  %v568_v38 = vld [vmem:[%s373_s12] sm:$0xf]  ;;  %s1255_s9 = scalar_lea.vmem [#allocation4], %s1351_s21 }
  0x24   : > { %462 = vmatpush.bf16.msra.mxu2 %v881_v4  ;;  %v574_v39 = vsel %vm507_vm2, %v568_v38, 0 }
  0x25   : > { %433 = vmatpush.bf16.msra.mxu1 %v879_v3 }
  0x26   : > { %404 = vmatpush.bf16.msra.mxu0 %v877_v5 }
  0x27   : > { %859 = vmatmul.msk.bf16.vlgmr.msra.gmra.mxu2 %vm393_vm0, %v376_v7 }
  0x28   : > { %850 = vmatmul.msk.bf16.vlgmr.msra.gmra.mxu1 %vm393_vm0, %v376_v7 }
  0x29   : > { %841 = vmatmul.msk.bf16.vlgmr.msra.gmra.mxu0 %vm393_vm0, %v376_v7 }
  0xa5   : > { %v435_v8 = vpop.f32.mrf.mxu1 }
  0xa6   : > { %v470_v9 = vpack.c.bf16 %v435_v8, %v435_v8  ;;  %v406_v10 = vpop.f32.mrf.mxu0 }
  0xa7   : > { %v469_v13 = vpack.c.bf16 %v406_v10, %v406_v10 }
  0xa8   : > { %v476_v11 = vsel %vm471_vm1, %v470_v9, 0 }
  0xa9   : > { %485 = vmatpush.bf16.xpose.msra.mxu3 %v476_v11 }
  0xaa   : > { %v464_v12 = vpop.f32.mrf.mxu2 }
  0xab   : > { %v468_v14 = vpack.c.bf16 %v464_v12, %v464_v12 }
  0xad   : > { %v437_v15 = vpop.f32.mrf.mxu1  ;;  %v509_v17 = vsel %vm507_vm2, %v468_v14, 0  ;;  %v524_v18 = vsel %vm471_vm1, %v468_v14, 0 }
  0xae   : > { %v408_v16 = vpop.f32.mrf.mxu0  ;;  %518 = vmatpush.bf16.msrb.mxu0 %v509_v17  ;;  %533 = vmatpush.bf16.xpose.msrb.mxu1 %v524_v18 }
  0xaf   : > { %562 = vmatpush.bf16.msrb.mxu2 %v509_v17 }
  0xb0   : > { %860 = vmatmul.msk.bf16.vlgmr.msra.gmra.mxu3 %vm471_vm1, %v469_v13 }
  0xb1   : > { %583 = vmatpush.bf16.msrb.mxu3 %v574_v39 }
  0xb2   : > { %v466_v19 = vpop.f32.mrf.mxu2  ;;  %600 = vmatpush.bf16.msra.mxu0 %v574_v39 }
  0xb5   : > { %862 = vmatmul.msk.bf16.vlgmr.msrb.gmra.mxu1 %vm471_vm1, %v468_v14 }
 0x132   : > { %v535_v21 = vpop.f32.mrf.mxu1 }
 0x133   : > { %v487_v20 = vpop.f32.mrf.mxu3  ;;  %v539_v24 = vmul.f32 0.35355338, %v535_v21 }
 0x134   : > { %v491_v22 = vmul.f32 0.35355338, %v487_v20 }
 0x135   : > { %v540_v27 = vsel %vm471_vm1, %v539_v24, -inf }
 0x136   : > { %v492_v23 = vsel %vm471_vm1, %v491_v22, -inf }
 0x137   : > { %493 = vmax.xlane.f32.xlu0 %v492_v23 }
 0x13a   : > { %v537_v26 = vpop.f32.mrf.mxu1 }
 0x13b   : > { %v489_v25 = vpop.f32.mrf.mxu3 }
 0x13f   : > { %541 = vmax.xlane.f32.xlu0 %v540_v27 }
 0x1aa   : > { %v494_v28 = vpop.xlane.xlu0 %493 }
 0x1ab   : > { %v495_v29 = vsub.f32 %v491_v22, %v494_v28 }
 0x1ad   : > { %v496_v30 = vmul.f32 1.442695, %v495_v29 }
 0x1af   : > { %960 = vpow2.f32 %v496_v30 }
 0x1b2   : > { %v542_v31 = vpop.xlane.xlu0 %541 }
 0x1b3   : > { %v543_v32 = vsub.f32 %v539_v24, %v542_v31 }
 0x1b5   : > { %v961_v33 = vpop.eup %960  ;;  %v544_v34 = vmul.f32 1.442695, %v543_v32 }
 0x1b6   : > { %v498_v35 = vsel %vm471_vm1, %v961_v33, 0.0 }
 0x1b7   : > { %962 = vpow2.f32 %v544_v34  ;;  %499 = vadd.xlane.f32.xlu1 %v498_v35 }
 0x1bd   : > { %v963_v36 = vpop.eup %962 }
 0x1be   : > { %v546_v37 = vsel %vm471_vm1, %v963_v36, 0.0 }
 0x1bf   : > { %547 = vadd.xlane.f32.xlu1 %v546_v37 }
 0x22a   : > { %v500_v40 = vpop.xlane.xlu1 %499 }
 0x22b   : > { %964 = vrcp.f32 %v500_v40 }
 0x231   : > { %v965_v41 = vpop.eup %964 }
 0x232   : > { %v502_v42 = vmul.f32 %v965_v41, %v961_v33  ;;  %v548_v43 = vpop.xlane.xlu1 %547 }
 0x233   : > { %966 = vrcp.f32 %v548_v43 }
 0x234   : > { %v503_v44 = vpack.c.bf16 %v502_v42, %v502_v42 }
 0x236   : > { %861 = vmatmul.msk.bf16.vlgmr.msrb.gmra.mxu0 %vm471_vm1, %v503_v44 }
 0x239   : > { %v967_v45 = vpop.eup %966 }
 0x23a   : > { %v550_v46 = vmul.f32 %v967_v45, %v963_v36 }
 0x23c   : > { %v551_v47 = vpack.c.bf16 %v550_v46, %v550_v46 }
 0x23e   : > { %863 = vmatmul.msk.bf16.vlgmr.msrb.gmra.mxu2 %vm471_vm1, %v551_v47 }
 0x2b3   : > { %v520_v48 = vpop.f32.mrf.mxu0 }
 0x2b4   : > { %v569_v49 = vpack.c.bf16 %v520_v48, %v520_v48 }
 0x2b6   : > { %864 = vmatmul.msk.bf16.vlgmr.msrb.gmra.mxu3 %vm471_vm1, %v569_v49 }
 0x2bb   : > { %v522_v50 = vpop.f32.mrf.mxu0 }
 0x2c1   : > { %v564_v51 = vpop.f32.mrf.mxu2 }
 0x2c2   : > { %v589_v52 = vpack.c.bf16 %v564_v51, %v564_v51 }
 0x2c4   : > { %865 = vmatmul.msk.bf16.vlgmr.msra.gmra.mxu0 %vm471_vm1, %v589_v52 }
 0x2c9   : > { %v566_v53 = vpop.f32.mrf.mxu2 }
 0x339   : > { %v585_v54 = vpop.f32.mrf.mxu3 }
 0x341   : > { %v587_v55 = vpop.f32.mrf.mxu3  ;;  %v602_v56 = vpop.f32.mrf.mxu0 }
 0x345   : > { %609 = sbr.rel (%p866_p0) target bundleno = 845 (0x34d), region = 48 }
 0x349   : > { %v604_v57 = vpop.f32.mrf.mxu0 }
 0x34a   : > { %v1097_v58 = vmov 0.0  }
 0x34b   : > { %610 = vst.msk [vmem:[%s343_s20] sm:$0xff] %vm393_vm0, %v1097_v58 }
 0x34c   : > { %611 = vst.msk [vmem:[%s1255_s9] sm:$0xff] %vm393_vm0, %v1097_v58 }
 0x34d PF: > { %p867_p1 = scmp.ne.s32.totalorder %s1079_s27, 3 }
 0x352   : > { %v612_v59 = vld [vmem:[%s343_s20] sm:$0xff]  ;;  %621 = sbr.rel (%p867_p1) target bundleno = 865 (0x361), region = 52 }
 0x353   : > { %v615_v60 = vld [vmem:[%s1255_s9] sm:$0xff]  ;;  %v613_v61 = vadd.f32 %v612_v59, %v602_v56 }
 0x354   : > { %v616_v62 = vadd.f32 %v615_v60, %v585_v54 }
 0x355   : > { %614 = vst.msk [vmem:[%s343_s20] sm:$0xff] %vm393_vm0, %v613_v61 }
 0x356   : > { %617 = vst.msk [vmem:[%s1255_s9] sm:$0xff] %vm393_vm0, %v616_v62 }
 0x357   : > { %v968_v0 = vld [vmem:[%s1336_s5] ss:$0 sm:$0xff] }
 0x35c   : > { %v623_v63 = vld [vmem:[%s343_s20] sm:$0xff] }
 0x35d   : > { %v629_v1 = vld [vmem:[%s1255_s9] sm:$0xff]  ;;  %v627_v2 = vadd.f32 %v968_v0, %v623_v63 }
 0x35e   : > { %v630_v3 = vadd.f32 %v968_v0, %v629_v1 }
 0x35f   : > { %628 = vst.msk [vmem:[%s343_s20] sm:$0xff] %vm393_vm0, %v627_v2 }
 0x360   : > { %631 = vst.msk [vmem:[%s1255_s9] sm:$0xff] %vm393_vm0, %v630_v3 }
 0x361 PF: > { %s870_s27 = sshll.u32 %s1083_s28, 3  ;;  %s650_s2 = sshll.u32 %s343_s20, 4  ;;  %s651_s2 = int_to_ptr.vmem [resolvable:$true] %s650_s2 }
 0x362   : > { %s648_s10 = scalar_lea.hbm %s1337_s6, %s870_s27  ;;  %s633_s11 = scalar_lea.sflag [#allocation3], %s1209_s18 }
 0x363   : > { %s652_s30 = sshll.u32 %s648_s10, 4  ;;  %s989_s28 = scalar_lea.hbm %s1337_s6, 16  ;;  %s653_s30 = int_to_ptr.hbm [resolvable:$true] %s652_s30 }
 0x364   : > { %s983_s12 = sshra.s32 %s653_s30, 4  ;;  %s984_s12 = int_to_ptr.hbm [resolvable:$true] %s983_s12 }
 0x365   : > { %s985_s19 = scalar_lea.hbm %s984_s12, 8  ;;  %p990_p6 = scmp.lt.s32.totalorder %s984_s12, %s1337_s6 }
 0x366   : > { %p986_p2 = scmp.ne.s32.totalorder %s984_s12, %s985_s19  ;;  %p991_p7 = scmp.lt.s32.totalorder %s989_s28, %s985_s19 }
 0x368   : > { %p987_p4 = pnand %p986_p2, %p1187_p3  ;;  %p992_p8 = por %p991_p7, %p990_p6 }
 0x36a   : > { %p988_p5 = pneg %p987_p4 }
 0x36c   : > { %p993_p10 = pnand %p992_p8, %p988_p5 }
 0x36e   : > { %996 = shalt.err (!%p993_p10)
}
 0x36f   : > { %883 = dma.vmem_to_hbm [thread:$0]  (%p1187_p3), %s651_s2, 128, %s653_s30, %s633_s11  }
 0x370   : > { %s662_s23 = scalar_lea.hbm %s1338_s7, %s870_s27  ;;  %s664_s10 = sshll.u32 %s1255_s9, 4  ;;  %s665_s10 = int_to_ptr.vmem [resolvable:$true] %s664_s10 }
 0x371   : > { %s666_s21 = sshll.u32 %s662_s23, 4  ;;  %s638_s0 = scalar_lea.sflag [#allocation5], %s1209_s18  ;;  %s667_s21 = int_to_ptr.hbm [resolvable:$true] %s666_s21 }
 0x372   : > { %s1011_s12 = sshra.s32 %s667_s21, 4  ;;  %s1017_s2 = scalar_lea.hbm %s1338_s7, 16  ;;  %s1012_s12 = int_to_ptr.hbm [resolvable:$true] %s1011_s12 }
 0x373   : > { %s1013_s19 = scalar_lea.hbm %s1012_s12, 8  ;;  %p1018_p0 = scmp.lt.s32.totalorder %s1012_s12, %s1338_s7 }
 0x374   : > { %p1014_p11 = scmp.ne.s32.totalorder %s1012_s12, %s1013_s19  ;;  %p1019_p1 = scmp.lt.s32.totalorder %s1017_s2, %s1013_s19 }
 0x376   : > { %p1015_p12 = pnand %p1014_p11, %p1187_p3  ;;  %p1020_p2 = por %p1019_p1, %p1018_p0 }
 0x378   : > { %p1016_p13 = pneg %p1015_p12 }
 0x37a   : > { %p1021_p4 = pnand %p1020_p2, %p1016_p13 }
 0x37c   : > { %1024 = shalt.err (!%p1021_p4)
}
 0x37d   : > { %884 = dma.vmem_to_hbm [thread:$0]  (%p1187_p3), %s665_s10, 128, %s667_s21, %s638_s0  }
 0x37e PF: > { %p894_p5 = scmp.ge.s32.totalorder %s1095_s8, 2  ;;  %s678_s18 = sand.u32 1, %s1067_s24  }
 0x37f   : > { %s679_s9 = scalar_lea.sflag [#allocation3], %s678_s18 }
 0x380   : > { %p888_p6 = pnand %p894_p5, %p1197_p9 }
 0x382   : > { %p889_p7 = pneg %p888_p6 }
 0x384   : > { %1058 = dma.done.wait (%p889_p7), %s679_s9, 128  }
 0x385   : > { %1060 = vsyncadd (%p889_p7), %s679_s9, 4294967168  ;;  %s689_s27 = scalar_lea.sflag [#allocation5], %s678_s18 }
 0x386   : > { %1062 = dma.done.wait (%p889_p7), %s689_s27, 128  }
 0x387   : > { %1064 = vsyncadd (%p889_p7), %s689_s27, 4294967168  ;;  %s24_s8 = sadd.s32 1, %s1095_s8   ;;  %s1352_s28 = sld [smem:[#allocation8_spill]] }
 0x388   : > { %p21_p8 = scmp.ge.s32.totalorder %s24_s8, 10   ;;  %s1353_s13 = sld [smem:[#allocation9_spill]] }
 0x389   : > { %s1354_s30 = sld [smem:[#allocation10_spill]]  ;;  %s1355_s24 = smov %s1071_s25 }
 0x38a   : > { %s1356_s25 = smov %s1075_s26  ;;  %s1357_s26 = smov %s1205_s17 }
 0x38b   : > { %s1358_s27 = smov %s1087_s29  ;;  %23 = sbr.rel (!%p21_p8) target bundleno = 10 (0xa), region = 116 }
 0x38e   : > { %s1359_s29 = smov %s1353_s13 }
 0x390   :  { %695 = vsyncpa [#allocation3], 1 }
 0x391   :  { %697 = vsyncpa [#allocation3 + $0x1], 1 }
 0x392   :  { %698 = vsyncpa [#allocation5], 1 }
 0x393   :  { %700 = vsyncpa [#allocation5 + $0x1], 1 }

</bundles_post_ra>
